<compile_context>
chip_gen: v7x
topology: tpu7x:2x2x1
jax: 0.10.0
libtpu: 0.0.40
codegen_flags: <defaults>
</compile_context>

<pallas_src>
import functools

import jax
import jax.numpy as jnp
from jax.experimental import pallas as pl
from jax.experimental.pallas import tpu as pltpu


def _round_up(v, m):
    return (v + m - 1) // m * m


def _cdiv(a, b):
    return (a + b - 1) // b


# --------------------------------------------------------------------------- #
# Hardware queries (best-effort, with safe fallbacks).
# --------------------------------------------------------------------------- #
def _device_kind():
    try:
        return jax.devices()[0].device_kind.lower()
    except Exception:
        return ""


def _supports_bf16_act():
    # v6e / v7x have bf16 VPU + EUP; v5e and older do not.
    kind = _device_kind()
    return ("v6" in kind) or ("v7" in kind)


def _vmem_capacity_bytes():
    try:
        return int(pltpu.get_tpu_info().vmem_capacity_bytes)
    except Exception:
        pass
    kind = _device_kind()
    if "v7" in kind:
        return 64 << 20          # v7x: 64 MiB per TensorCore
    return 128 << 20             # v5e / v6e: 128 MiB


# --------------------------------------------------------------------------- #
# Kernel
# --------------------------------------------------------------------------- #
def _mlp_kernel(x_ref, w1_ref, b1_ref, w2_ref, b2_ref,
                w3_ref, b3_ref, w4_ref, b4_ref, o_ref, *, act_dtype):
    # x_ref: (TB, D_in) f32 -> cast to bf16 here (VPU, hidden under DMA/MXU).
    # w*_ref: (D_prev, D_next) bf16.  b*_ref: (1, D_next) f32.
    h = x_ref[...].astype(jnp.bfloat16)

    def layer(h_bf16, w_ref, b_ref):
        acc = jnp.dot(h_bf16, w_ref[...], preferred_element_type=jnp.float32)
        act = jnp.tanh((acc + b_ref[...]).astype(act_dtype))
        return act.astype(jnp.bfloat16)

    h = layer(h, w1_ref, b1_ref)
    h = layer(h, w2_ref, b2_ref)
    h = layer(h, w3_ref, b3_ref)
    out = jnp.dot(h, w4_ref[...], preferred_element_type=jnp.float32) + b4_ref[...]
    o_ref[...] = jnp.clip(out, -0.2, 0.2).astype(o_ref.dtype)


# --------------------------------------------------------------------------- #
# Param preparation (run once, outside the per-call path).
# --------------------------------------------------------------------------- #
def prepare_params(params):
    """Pad feature dims to 128 lanes and cast weights to bf16 (zero padding is exact)."""
    d_in, hid = params["w1"].shape
    d_out = params["w4"].shape[1]
    hid_p = _round_up(hid, 128)
    d_out_p = _round_up(d_out, 128)

    def pad2(a, rows, cols, dtype):
        return jnp.pad(a, ((0, rows - a.shape[0]), (0, cols - a.shape[1]))).astype(dtype)

    return {
        "w1": pad2(params["w1"], d_in, hid_p, jnp.bfloat16),
        "w2": pad2(params["w2"], hid_p, hid_p, jnp.bfloat16),
        "w3": pad2(params["w3"], hid_p, hid_p, jnp.bfloat16),
        "w4": pad2(params["w4"], hid_p, d_out_p, jnp.bfloat16),
        "b1": pad2(params["b1"], 1, hid_p, jnp.float32),
        "b2": pad2(params["b2"], 1, hid_p, jnp.float32),
        "b3": pad2(params["b3"], 1, hid_p, jnp.float32),
        "b4": pad2(params["b4"], 1, d_out_p, jnp.float32),
        "d_out": int(d_out),
    }


# --------------------------------------------------------------------------- #
# Forward pass wrapper
# --------------------------------------------------------------------------- #
def linear_aligner3(x, prepped, *, batch_tile=1024, act_dtype=None):
    """Forward pass of LinearAligner3.

    x: (B, clip_embed_dim) float32 (unpadded).
    prepped: output of prepare_params() (padded bf16 weights, f32 biases).
    """
    B, d_in = x.shape
    assert prepped["w1"].shape[0] == d_in, "x feature dim must match w1 rows"
    hid_p = prepped["w1"].shape[1]
    d_out_p = prepped["w4"].shape[1]
    d_out = prepped["d_out"]

    if act_dtype is None:
        act_dtype = jnp.bfloat16 if _supports_bf16_act() else jnp.float32

    # Batch tiling: no batch padding; ragged last tile is masked on store.
    # Split mid/large batches into >=2 steps so the parallel axis can shard
    # across v7x's two TensorCores.
    tb_max = max(16, _round_up(batch_tile, 16))
    if B > tb_max:
        tb = tb_max
    elif B >= 256:
        tb = _round_up(_cdiv(B, 2), 16)
    else:
        tb = _round_up(max(B, 1), 16)
    grid = (_cdiv(B, tb),)

    # VMEM budget from the actual footprint, capped per-generation
    # (never exceeds v7x's 64 MiB VMEM per TensorCore).
    w_bytes = sum(prepped[k].size for k in ("w1", "w2", "w3", "w4")) * 2   # bf16
    b_bytes = sum(prepped[k].size for k in ("b1", "b2", "b3", "b4")) * 4   # f32
    need = (
        2 * tb * d_in * 4                        # x tiles (f32, double-buffered)
        + 2 * tb * d_out_p * 4                   # out tiles (f32, double-buffered)
        + 2 * (w_bytes + b_bytes)                # weights/biases (worst case 2 buffers)
        + 4 * tb * max(hid_p, d_out_p) * 4       # activation headroom
        + (8 << 20)                              # slack
    )
    cap = _vmem_capacity_bytes()
    vmem_limit = int(min(need, cap - (16 << 20), 100 << 20))
    vmem_limit = max(vmem_limit, 16 << 20)

    kernel = functools.partial(_mlp_kernel, act_dtype=act_dtype)

    def build(buffered_weights):
        def weight_spec(a):
            if buffered_weights:
                return pl.BlockSpec(a.shape, lambda i: (0, 0),
                                    pipeline_mode=pl.Buffered(1))
            return pl.BlockSpec(a.shape, lambda i: (0, 0))

        in_specs = [pl.BlockSpec((tb, d_in), lambda i: (i, 0))]   # x tile
        for name in ("w1", "b1", "w2", "b2", "w3", "b3", "w4", "b4"):
            in_specs.append(weight_spec(prepped[name]))

        return pl.pallas_call(
            kernel,
            out_shape=jax.ShapeDtypeStruct((B, d_out_p), jnp.float32),
            grid_spec=pltpu.PrefetchScalarGridSpec(
                num_scalar_prefetch=0,
                grid=grid,
                in_specs=in_specs,
                out_specs=pl.BlockSpec((tb, d_out_p), lambda i: (i, 0)),
            ),
            compiler_params=pltpu.CompilerParams(
                dimension_semantics=("parallel",),
                vmem_limit_bytes=vmem_limit),
        )

    args = (x, prepped["w1"], prepped["b1"], prepped["w2"], prepped["b2"],
            prepped["w3"], prepped["b3"], prepped["w4"], prepped["b4"])
    try:
        out_p = build(buffered_weights=True)(*args)
    except Exception:
        # Fallback if single-buffered (Buffered(1)) constant-block specs are
        # not supported by this JAX version.
        out_p = build(buffered_weights=False)(*args)

    if d_out == d_out_p:
        return out_p
    return out_p[:, :d_out]   # slice off lane padding


# --------------------------------------------------------------------------- #
# Init + references
# --------------------------------------------------------------------------- #
def init_params(key, clip_embed_dim, clap_embed_dim):
    """Deterministic init mimicking nn.Linear's U(-1/sqrt(fan_in), 1/sqrt(fan_in))."""
    dims = [(clip_embed_dim, clap_embed_dim),
            (clap_embed_dim, clap_embed_dim),
            (clap_embed_dim, clap_embed_dim),
            (clap_embed_dim, clap_embed_dim)]
    params = {}
    for idx, (fan_in, fan_out) in enumerate(dims, start=1):
        key, kw, kb = jax.random.split(key, 3)
        bound = 1.0 / jnp.sqrt(fan_in)
        params[f"w{idx}"] = jax.random.uniform(
            kw, (fan_in, fan_out), jnp.float32, -bound, bound)
        params[f"b{idx}"] = jax.random.uniform(
            kb, (1, fan_out), jnp.float32, -bound, bound)
    return params


def _reference(x, p, act_dtype):
    # Pure-JAX reference with the same bf16-operand / f32-accumulate recipe
    # and the same activation dtype as the kernel.
    bf = jnp.bfloat16

    def lin(a, w, b):
        return jnp.dot(a.astype(bf), w.astype(bf),
                       preferred_element_type=jnp.float32) + b

    h = jnp.tanh(lin(x, p["w1"], p["b1"]).astype(act_dtype))
    h = jnp.tanh(lin(h, p["w2"], p["b2"]).astype(act_dtype))
    h = jnp.tanh(lin(h, p["w3"], p["b3"]).astype(act_dtype))
    return jnp.clip(lin(h, p["w4"], p["b4"]), -0.2, 0.2)


def _reference_f32(x, p):
    h = jnp.tanh(x @ p["w1"] + p["b1"])
    h = jnp.tanh(h @ p["w2"] + p["b2"])
    h = jnp.tanh(h @ p["w3"] + p["b3"])
    return jnp.clip(h @ p["w4"] + p["b4"], -0.2, 0.2)


if __name__ == "__main__":
    clip_embed_dim = 32
    clap_embed_dim = 32
    batch = 8

    key = jax.random.PRNGKey(0)
    key, kx, kx2 = jax.random.split(key, 3)
    params = init_params(key, clip_embed_dim, clap_embed_dim)
    prepped = prepare_params(params)   # pad + cast weights once, not per call

    act_dtype = jnp.bfloat16 if _supports_bf16_act() else jnp.float32
    # bf16 tanh can round differently than the XLA reference by ~1 ulp per layer.
    tol_vs_bf16_ref = 2e-3 if act_dtype == jnp.float32 else 2.5e-2

    # Small case (single grid step, ragged tile: B=8 < tb=16).
    x = jax.random.normal(kx, (batch, clip_embed_dim), jnp.float32)
    out = jax.block_until_ready(linear_aligner3(x, prepped))
    assert out.shape == (batch, clap_embed_dim)
    assert jnp.allclose(out, _reference(x, params, act_dtype), atol=tol_vs_bf16_ref), \
        "mismatch vs bf16 reference (small batch)"
    assert jnp.allclose(out, _reference_f32(x, params), atol=6e-2), \
        "mismatch vs f32 reference (small batch)"

    # Larger case: >=2 grid steps (dual-TC shardable) + ragged last tile, no padding.
    x2 = jax.random.normal(kx2, (300, clip_embed_dim), jnp.float32)
    out2 = jax.block_until_ready(linear_aligner3(x2, prepped, batch_tile=1024))
    assert out2.shape == (300, clap_embed_dim)
    assert jnp.allclose(out2, _reference(x2, params, act_dtype), atol=tol_vs_bf16_ref), \
        "mismatch vs bf16 reference (tiled batch)"

    print("KERNEL_OK")
</pallas_src>

<mosaic_0001>
module attributes {stable_mosaic.version = 11 : i64} {
  func.func @_mlp_kernel(%arg0: i32, %arg1: memref<16x32xf32, #tpu.memory_space<vmem>>, %arg2: memref<32x128xbf16, #tpu.memory_space<vmem>>, %arg3: memref<1x128xf32, #tpu.memory_space<vmem>>, %arg4: memref<128x128xbf16, #tpu.memory_space<vmem>>, %arg5: memref<1x128xf32, #tpu.memory_space<vmem>>, %arg6: memref<128x128xbf16, #tpu.memory_space<vmem>>, %arg7: memref<1x128xf32, #tpu.memory_space<vmem>>, %arg8: memref<128x128xbf16, #tpu.memory_space<vmem>>, %arg9: memref<1x128xf32, #tpu.memory_space<vmem>>, %arg10: memref<16x128xf32, #tpu.memory_space<vmem>>) attributes {dimension_semantics = [#tpu.dimension_semantics<parallel>], iteration_bounds = array<i64: 1>, scalar_prefetch = 0 : i64, scratch_operands = 0 : i64, tpu.core_type = #tpu.core_type<tc>, window_params = [{transform_indices = @transform_0, window_bounds = array<i64: 16, 32>}, {pipeline_mode = #tpu.pipeline_mode<synchronous>, transform_indices = @transform_1, window_bounds = array<i64: 32, 128>}, {pipeline_mode = #tpu.pipeline_mode<synchronous>, transform_indices = @transform_2, window_bounds = array<i64: 1, 128>}, {pipeline_mode = #tpu.pipeline_mode<synchronous>, transform_indices = @transform_3, window_bounds = array<i64: 128, 128>}, {pipeline_mode = #tpu.pipeline_mode<synchronous>, transform_indices = @transform_4, window_bounds = array<i64: 1, 128>}, {pipeline_mode = #tpu.pipeline_mode<synchronous>, transform_indices = @transform_5, window_bounds = array<i64: 128, 128>}, {pipeline_mode = #tpu.pipeline_mode<synchronous>, transform_indices = @transform_6, window_bounds = array<i64: 1, 128>}, {pipeline_mode = #tpu.pipeline_mode<synchronous>, transform_indices = @transform_7, window_bounds = array<i64: 128, 128>}, {pipeline_mode = #tpu.pipeline_mode<synchronous>, transform_indices = @transform_8, window_bounds = array<i64: 1, 128>}, {transform_indices = @transform_9, window_bounds = array<i64: 16, 128>}]} {
    %c0 = arith.constant 0 : index
    %c0_0 = arith.constant 0 : index
    %0 = vector.load %arg1[%c0, %c0_0] : memref<16x32xf32, #tpu.memory_space<vmem>>, vector<16x32xf32>
    %1 = arith.truncf %0 : vector<16x32xf32> to vector<16x32xbf16>
    %c0_1 = arith.constant 0 : index
    %c0_2 = arith.constant 0 : index
    %2 = vector.load %arg2[%c0_1, %c0_2] : memref<32x128xbf16, #tpu.memory_space<vmem>>, vector<32x128xbf16>
    %cst = arith.constant dense<0.000000e+00> : vector<16x128xf32>
    %3 = tpu.matmul %1, %2, %cst {dimension_numbers = #tpu.dot_dimension_numbers<[1], [0], [0], [1], [0, 0, 1, 1], [], []>} : vector<16x32xbf16>, vector<32x128xbf16>, vector<16x128xf32> -> vector<16x128xf32>
    %c0_3 = arith.constant 0 : index
    %c0_4 = arith.constant 0 : index
    %4 = vector.load %arg3[%c0_3, %c0_4] : memref<1x128xf32, #tpu.memory_space<vmem>>, vector<1x128xf32>
    %5 = vector.broadcast %4 : vector<1x128xf32> to vector<16x128xf32>
    %6 = arith.addf %3, %5 : vector<16x128xf32>
    %7 = math.tanh %6 : vector<16x128xf32>
    %8 = arith.truncf %7 : vector<16x128xf32> to vector<16x128xbf16>
    %c0_5 = arith.constant 0 : index
    %c0_6 = arith.constant 0 : index
    %9 = vector.load %arg4[%c0_5, %c0_6] : memref<128x128xbf16, #tpu.memory_space<vmem>>, vector<128x128xbf16>
    %cst_7 = arith.constant dense<0.000000e+00> : vector<16x128xf32>
    %10 = tpu.matmul %8, %9, %cst_7 {dimension_numbers = #tpu.dot_dimension_numbers<[1], [0], [0], [1], [0, 0, 1, 1], [], []>} : vector<16x128xbf16>, vector<128x128xbf16>, vector<16x128xf32> -> vector<16x128xf32>
    %c0_8 = arith.constant 0 : index
    %c0_9 = arith.constant 0 : index
    %11 = vector.load %arg5[%c0_8, %c0_9] : memref<1x128xf32, #tpu.memory_space<vmem>>, vector<1x128xf32>
    %12 = vector.broadcast %11 : vector<1x128xf32> to vector<16x128xf32>
    %13 = arith.addf %10, %12 : vector<16x128xf32>
    %14 = math.tanh %13 : vector<16x128xf32>
    %15 = arith.truncf %14 : vector<16x128xf32> to vector<16x128xbf16>
    %c0_10 = arith.constant 0 : index
    %c0_11 = arith.constant 0 : index
    %16 = vector.load %arg6[%c0_10, %c0_11] : memref<128x128xbf16, #tpu.memory_space<vmem>>, vector<128x128xbf16>
    %cst_12 = arith.constant dense<0.000000e+00> : vector<16x128xf32>
    %17 = tpu.matmul %15, %16, %cst_12 {dimension_numbers = #tpu.dot_dimension_numbers<[1], [0], [0], [1], [0, 0, 1, 1], [], []>} : vector<16x128xbf16>, vector<128x128xbf16>, vector<16x128xf32> -> vector<16x128xf32>
    %c0_13 = arith.constant 0 : index
    %c0_14 = arith.constant 0 : index
    %18 = vector.load %arg7[%c0_13, %c0_14] : memref<1x128xf32, #tpu.memory_space<vmem>>, vector<1x128xf32>
    %19 = vector.broadcast %18 : vector<1x128xf32> to vector<16x128xf32>
    %20 = arith.addf %17, %19 : vector<16x128xf32>
    %21 = math.tanh %20 : vector<16x128xf32>
    %22 = arith.truncf %21 : vector<16x128xf32> to vector<16x128xbf16>
    %c0_15 = arith.constant 0 : index
    %c0_16 = arith.constant 0 : index
    %23 = vector.load %arg8[%c0_15, %c0_16] : memref<128x128xbf16, #tpu.memory_space<vmem>>, vector<128x128xbf16>
    %cst_17 = arith.constant dense<0.000000e+00> : vector<16x128xf32>
    %24 = tpu.matmul %22, %23, %cst_17 {dimension_numbers = #tpu.dot_dimension_numbers<[1], [0], [0], [1], [0, 0, 1, 1], [], []>} : vector<16x128xbf16>, vector<128x128xbf16>, vector<16x128xf32> -> vector<16x128xf32>
    %c0_18 = arith.constant 0 : index
    %c0_19 = arith.constant 0 : index
    %25 = vector.load %arg9[%c0_18, %c0_19] : memref<1x128xf32, #tpu.memory_space<vmem>>, vector<1x128xf32>
    %26 = vector.broadcast %25 : vector<1x128xf32> to vector<16x128xf32>
    %27 = arith.addf %24, %26 : vector<16x128xf32>
    %cst_20 = arith.constant -2.000000e-01 : f32
    %cst_21 = arith.constant 2.000000e-01 : f32
    %28 = vector.broadcast %cst_20 : f32 to vector<16x128xf32>
    %29 = arith.maximumf %28, %27 : vector<16x128xf32>
    %30 = vector.broadcast %cst_21 : f32 to vector<16x128xf32>
    %31 = arith.minimumf %30, %29 : vector<16x128xf32>
    %c0_22 = arith.constant 0 : index
    %c0_23 = arith.constant 0 : index
    %32 = vector.load %arg10[%c0_22, %c0_23] : memref<16x128xf32, #tpu.memory_space<vmem>>, vector<16x128xf32>
    tpu.vector_store %arg10[%c0_22, %c0_23], %31 {strides = array<i32>} : memref<16x128xf32, #tpu.memory_space<vmem>>, vector<16x128xf32>,
    return
  }
  func.func @transform_0(%arg0: i32) -> (i32, i32) {
    %c0_i32 = arith.constant 0 : i32
    %c0_i32_0 = arith.constant 0 : i32
    return %arg0, %c0_i32 : i32, i32
  }
  func.func @transform_1(%arg0: i32) -> (i32, i32) {
    %c0_i32 = arith.constant 0 : i32
    %c0_i32_0 = arith.constant 0 : i32
    %c0_i32_1 = arith.constant 0 : i32
    return %c0_i32, %c0_i32_0 : i32, i32
  }
  func.func @transform_2(%arg0: i32) -> (i32, i32) {
    %c0_i32 = arith.constant 0 : i32
    %c0_i32_0 = arith.constant 0 : i32
    %c0_i32_1 = arith.constant 0 : i32
    return %c0_i32, %c0_i32_0 : i32, i32
  }
  func.func @transform_3(%arg0: i32) -> (i32, i32) {
    %c0_i32 = arith.constant 0 : i32
    %c0_i32_0 = arith.constant 0 : i32
    %c0_i32_1 = arith.constant 0 : i32
    return %c0_i32, %c0_i32_0 : i32, i32
  }
  func.func @transform_4(%arg0: i32) -> (i32, i32) {
    %c0_i32 = arith.constant 0 : i32
    %c0_i32_0 = arith.constant 0 : i32
    %c0_i32_1 = arith.constant 0 : i32
    return %c0_i32, %c0_i32_0 : i32, i32
  }
  func.func @transform_5(%arg0: i32) -> (i32, i32) {
    %c0_i32 = arith.constant 0 : i32
    %c0_i32_0 = arith.constant 0 : i32
    %c0_i32_1 = arith.constant 0 : i32
    return %c0_i32, %c0_i32_0 : i32, i32
  }
  func.func @transform_6(%arg0: i32) -> (i32, i32) {
    %c0_i32 = arith.constant 0 : i32
    %c0_i32_0 = arith.constant 0 : i32
    %c0_i32_1 = arith.constant 0 : i32
    return %c0_i32, %c0_i32_0 : i32, i32
  }
  func.func @transform_7(%arg0: i32) -> (i32, i32) {
    %c0_i32 = arith.constant 0 : i32
    %c0_i32_0 = arith.constant 0 : i32
    %c0_i32_1 = arith.constant 0 : i32
    return %c0_i32, %c0_i32_0 : i32, i32
  }
  func.func @transform_8(%arg0: i32) -> (i32, i32) {
    %c0_i32 = arith.constant 0 : i32
    %c0_i32_0 = arith.constant 0 : i32
    %c0_i32_1 = arith.constant 0 : i32
    return %c0_i32, %c0_i32_0 : i32, i32
  }
  func.func @transform_9(%arg0: i32) -> (i32, i32) {
    %c0_i32 = arith.constant 0 : i32
    %c0_i32_0 = arith.constant 0 : i32
    return %arg0, %c0_i32 : i32, i32
  }
}

module attributes {stable_mosaic.version = 11 : i64} {
  func.func @_mlp_kernel(%arg0: i32, %arg1: memref<16x32xf32, #tpu.memory_space<vmem>>, %arg2: memref<32x128xbf16, #tpu.memory_space<vmem>>, %arg3: memref<1x128xf32, #tpu.memory_space<vmem>>, %arg4: memref<128x128xbf16, #tpu.memory_space<vmem>>, %arg5: memref<1x128xf32, #tpu.memory_space<vmem>>, %arg6: memref<128x128xbf16, #tpu.memory_space<vmem>>, %arg7: memref<1x128xf32, #tpu.memory_space<vmem>>, %arg8: memref<128x128xbf16, #tpu.memory_space<vmem>>, %arg9: memref<1x128xf32, #tpu.memory_space<vmem>>, %arg10: memref<16x128xf32, #tpu.memory_space<vmem>>) attributes {dimension_semantics = [#tpu.dimension_semantics<parallel>], iteration_bounds = array<i64: 1>, scalar_prefetch = 0 : i64, scratch_operands = 0 : i64, tpu.core_type = #tpu.core_type<tc>, window_params = [{transform_indices = @transform_0, window_bounds = array<i64: 16, 32>}, {pipeline_mode = #tpu.pipeline_mode<synchronous>, transform_indices = @transform_1, window_bounds = array<i64: 32, 128>}, {pipeline_mode = #tpu.pipeline_mode<synchronous>, transform_indices = @transform_2, window_bounds = array<i64: 1, 128>}, {pipeline_mode = #tpu.pipeline_mode<synchronous>, transform_indices = @transform_3, window_bounds = array<i64: 128, 128>}, {pipeline_mode = #tpu.pipeline_mode<synchronous>, transform_indices = @transform_4, window_bounds = array<i64: 1, 128>}, {pipeline_mode = #tpu.pipeline_mode<synchronous>, transform_indices = @transform_5, window_bounds = array<i64: 128, 128>}, {pipeline_mode = #tpu.pipeline_mode<synchronous>, transform_indices = @transform_6, window_bounds = array<i64: 1, 128>}, {pipeline_mode = #tpu.pipeline_mode<synchronous>, transform_indices = @transform_7, window_bounds = array<i64: 128, 128>}, {pipeline_mode = #tpu.pipeline_mode<synchronous>, transform_indices = @transform_8, window_bounds = array<i64: 1, 128>}, {transform_indices = @transform_9, window_bounds = array<i64: 16, 128>}]} {
    %c0 = arith.constant 0 : index
    %c0_0 = arith.constant 0 : index
    %0 = vector.load %arg1[%c0, %c0_0] : memref<16x32xf32, #tpu.memory_space<vmem>>, vector<16x32xf32>
    %1 = arith.truncf %0 : vector<16x32xf32> to vector<16x32xbf16>
    %c0_1 = arith.constant 0 : index
    %c0_2 = arith.constant 0 : index
    %2 = vector.load %arg2[%c0_1, %c0_2] : memref<32x128xbf16, #tpu.memory_space<vmem>>, vector<32x128xbf16>
    %cst = arith.constant dense<0.000000e+00> : vector<16x128xf32>
    %3 = tpu.matmul %1, %2, %cst {dimension_numbers = #tpu.dot_dimension_numbers<[1], [0], [0], [1], [0, 0, 1, 1], [], []>} : vector<16x32xbf16>, vector<32x128xbf16>, vector<16x128xf32> -> vector<16x128xf32>
    %c0_3 = arith.constant 0 : index
    %c0_4 = arith.constant 0 : index
    %4 = vector.load %arg3[%c0_3, %c0_4] : memref<1x128xf32, #tpu.memory_space<vmem>>, vector<1x128xf32>
    %5 = vector.broadcast %4 : vector<1x128xf32> to vector<16x128xf32>
    %6 = arith.addf %3, %5 : vector<16x128xf32>
    %7 = math.tanh %6 : vector<16x128xf32>
    %8 = arith.truncf %7 : vector<16x128xf32> to vector<16x128xbf16>
    %c0_5 = arith.constant 0 : index
    %c0_6 = arith.constant 0 : index
    %9 = vector.load %arg4[%c0_5, %c0_6] : memref<128x128xbf16, #tpu.memory_space<vmem>>, vector<128x128xbf16>
    %cst_7 = arith.constant dense<0.000000e+00> : vector<16x128xf32>
    %10 = tpu.matmul %8, %9, %cst_7 {dimension_numbers = #tpu.dot_dimension_numbers<[1], [0], [0], [1], [0, 0, 1, 1], [], []>} : vector<16x128xbf16>, vector<128x128xbf16>, vector<16x128xf32> -> vector<16x128xf32>
    %c0_8 = arith.constant 0 : index
    %c0_9 = arith.constant 0 : index
    %11 = vector.load %arg5[%c0_8, %c0_9] : memref<1x128xf32, #tpu.memory_space<vmem>>, vector<1x128xf32>
    %12 = vector.broadcast %11 : vector<1x128xf32> to vector<16x128xf32>
    %13 = arith.addf %10, %12 : vector<16x128xf32>
    %14 = math.tanh %13 : vector<16x128xf32>
    %15 = arith.truncf %14 : vector<16x128xf32> to vector<16x128xbf16>
    %c0_10 = arith.constant 0 : index
    %c0_11 = arith.constant 0 : index
    %16 = vector.load %arg6[%c0_10, %c0_11] : memref<128x128xbf16, #tpu.memory_space<vmem>>, vector<128x128xbf16>
    %cst_12 = arith.constant dense<0.000000e+00> : vector<16x128xf32>
    %17 = tpu.matmul %15, %16, %cst_12 {dimension_numbers = #tpu.dot_dimension_numbers<[1], [0], [0], [1], [0, 0, 1, 1], [], []>} : vector<16x128xbf16>, vector<128x128xbf16>, vector<16x128xf32> -> vector<16x128xf32>
    %c0_13 = arith.constant 0 : index
    %c0_14 = arith.constant 0 : index
    %18 = vector.load %arg7[%c0_13, %c0_14] : memref<1x128xf32, #tpu.memory_space<vmem>>, vector<1x128xf32>
    %19 = vector.broadcast %18 : vector<1x128xf32> to vector<16x128xf32>
    %20 = arith.addf %17, %19 : vector<16x128xf32>
    %21 = math.tanh %20 : vector<16x128xf32>
    %22 = arith.truncf %21 : vector<16x128xf32> to vector<16x128xbf16>
    %c0_15 = arith.constant 0 : index
    %c0_16 = arith.constant 0 : index
    %23 = vector.load %arg8[%c0_15, %c0_16] : memref<128x128xbf16, #tpu.memory_space<vmem>>, vector<128x128xbf16>
    %cst_17 = arith.constant dense<0.000000e+00> : vector<16x128xf32>
    %24 = tpu.matmul %22, %23, %cst_17 {dimension_numbers = #tpu.dot_dimension_numbers<[1], [0], [0], [1], [0, 0, 1, 1], [], []>} : vector<16x128xbf16>, vector<128x128xbf16>, vector<16x128xf32> -> vector<16x128xf32>
    %c0_18 = arith.constant 0 : index
    %c0_19 = arith.constant 0 : index
    %25 = vector.load %arg9[%c0_18, %c0_19] : memref<1x128xf32, #tpu.memory_space<vmem>>, vector<1x128xf32>
    %26 = vector.broadcast %25 : vector<1x128xf32> to vector<16x128xf32>
    %27 = arith.addf %24, %26 : vector<16x128xf32>
    %cst_20 = arith.constant -2.000000e-01 : f32
    %cst_21 = arith.constant 2.000000e-01 : f32
    %28 = vector.broadcast %cst_20 : f32 to vector<16x128xf32>
    %29 = arith.maximumf %28, %27 : vector<16x128xf32>
    %30 = vector.broadcast %cst_21 : f32 to vector<16x128xf32>
    %31 = arith.minimumf %30, %29 : vector<16x128xf32>
    %c0_22 = arith.constant 0 : index
    %c0_23 = arith.constant 0 : index
    %32 = vector.load %arg10[%c0_22, %c0_23] : memref<16x128xf32, #tpu.memory_space<vmem>>, vector<16x128xf32>
    tpu.vector_store %arg10[%c0_22, %c0_23], %31 {strides = array<i32>} : memref<16x128xf32, #tpu.memory_space<vmem>>, vector<16x128xf32>,
    return
  }
  func.func @transform_0(%arg0: i32) -> (i32, i32) {
    %c0_i32 = arith.constant 0 : i32
    %c0_i32_0 = arith.constant 0 : i32
    return %arg0, %c0_i32 : i32, i32
  }
  func.func @transform_1(%arg0: i32) -> (i32, i32) {
    %c0_i32 = arith.constant 0 : i32
    %c0_i32_0 = arith.constant 0 : i32
    %c0_i32_1 = arith.constant 0 : i32
    return %c0_i32, %c0_i32_0 : i32, i32
  }
  func.func @transform_2(%arg0: i32) -> (i32, i32) {
    %c0_i32 = arith.constant 0 : i32
    %c0_i32_0 = arith.constant 0 : i32
    %c0_i32_1 = arith.constant 0 : i32
    return %c0_i32, %c0_i32_0 : i32, i32
  }
  func.func @transform_3(%arg0: i32) -> (i32, i32) {
    %c0_i32 = arith.constant 0 : i32
    %c0_i32_0 = arith.constant 0 : i32
    %c0_i32_1 = arith.constant 0 : i32
    return %c0_i32, %c0_i32_0 : i32, i32
  }
  func.func @transform_4(%arg0: i32) -> (i32, i32) {
    %c0_i32 = arith.constant 0 : i32
    %c0_i32_0 = arith.constant 0 : i32
    %c0_i32_1 = arith.constant 0 : i32
    return %c0_i32, %c0_i32_0 : i32, i32
  }
  func.func @transform_5(%arg0: i32) -> (i32, i32) {
    %c0_i32 = arith.constant 0 : i32
    %c0_i32_0 = arith.constant 0 : i32
    %c0_i32_1 = arith.constant 0 : i32
    return %c0_i32, %c0_i32_0 : i32, i32
  }
  func.func @transform_6(%arg0: i32) -> (i32, i32) {
    %c0_i32 = arith.constant 0 : i32
    %c0_i32_0 = arith.constant 0 : i32
    %c0_i32_1 = arith.constant 0 : i32
    return %c0_i32, %c0_i32_0 : i32, i32
  }
  func.func @transform_7(%arg0: i32) -> (i32, i32) {
    %c0_i32 = arith.constant 0 : i32
    %c0_i32_0 = arith.constant 0 : i32
    %c0_i32_1 = arith.constant 0 : i32
    return %c0_i32, %c0_i32_0 : i32, i32
  }
  func.func @transform_8(%arg0: i32) -> (i32, i32) {
    %c0_i32 = arith.constant 0 : i32
    %c0_i32_0 = arith.constant 0 : i32
    %c0_i32_1 = arith.constant 0 : i32
    return %c0_i32, %c0_i32_0 : i32, i32
  }
  func.func @transform_9(%arg0: i32) -> (i32, i32) {
    %c0_i32 = arith.constant 0 : i32
    %c0_i32_0 = arith.constant 0 : i32
    return %arg0, %c0_i32 : i32, i32
  }
}

</mosaic_0001>

<bundles_post_ra>
// kernel: tpu_custom_call.1
= control target key start
LH: loop header
LB: loop body
LE: loop exit
PB: predicated region body
PF: predicated region fallthrough
CT: control target
= control target key end

     0   :  { %14 = vsyncpa [#allocation3], 0  ;;  %s1062_s0 = inlined_call_operand.hbm [shape: f32[8,32], index: 0, kind: input, shape index: {}]   ;;  %s1063_s1 = inlined_call_operand.hbm [shape: bf16[32,128], index: 1, kind: input, shape index: {}]   ;;  %s1064_s2 = inlined_call_operand.vmem [shape: f32[1,128], index: 2, kind: input, shape index: {}]   ;;  %s1065_s3 = inlined_call_operand.hbm [shape: bf16[128,128], index: 3, kind: input, shape index: {}]   ;;  %s1066_s4 = inlined_call_operand.vmem [shape: f32[1,128], index: 4, kind: input, shape index: {}]   ;;  %s1067_s5 = inlined_call_operand.hbm [shape: bf16[128,128], index: 5, kind: input, shape index: {}]   ;;  %s1068_s6 = inlined_call_operand.vmem [shape: f32[1,128], index: 6, kind: input, shape index: {}]   ;;  %s1069_s7 = inlined_call_operand.hbm [shape: bf16[128,128], index: 7, kind: input, shape index: {}]   ;;  %s1070_s8 = inlined_call_operand.vmem [shape: f32[1,128], index: 8, kind: input, shape index: {}]   ;;  %s1071_s9 = inlined_call_operand.hbm [shape: f32[8,128], index: 9, kind: output, shape index: {}]  }
   0x1   :  { %15 = vsyncpa [#allocation6], 0 }
   0x2   :  { %16 = vsyncpa [#allocation9], 0 }
   0x3   :  { %17 = vsyncpa [#allocation4], 0 }
   0x4   :  { %22 = vsyncadd [#allocation3], 128  ;;  %s864_s30 = smov [#allocation5]   ;;  %s724_s13 = scalar_lea.hbm %s1063_s1, 256 }
   0x5   :  { %s35_s10 = sshll.u32 %s864_s30, 4  ;;  %p725_p0 = scmp.ne.s32.totalorder %s1063_s1, %s724_s13  ;;  %s36_s10 = int_to_ptr.vmem [resolvable:$true] %s35_s10 }
   0x6   :  { %p728_p1 = scmp.lt.u32.totalorder %s724_s13, %s1063_s1 }
   0x8   :  { %p730_p2 = pnand %p728_p1, %p725_p0 }
   0xa   :  { %733 = shalt.err (!%p730_p2)
}
   0xb   :  { %s734_s18 = scalar_lea.vmem %s36_s10, 256  ;;  %p739_p4 = scmp.lt.s32.totalorder %s36_s10, %s36_s10 }
   0xc   :  { %p735_p3 = scmp.ne.s32.totalorder %s36_s10, %s734_s18  ;;  %p740_p5 = scmp.lt.s32.totalorder %s734_s18, %s734_s18 }
   0xe   :  { %p741_p6 = por %p740_p5, %p739_p4 }
  0x10   :  { %p742_p7 = pnand %p741_p6, %p735_p3 }
  0x12   :  { %745 = shalt.err (!%p742_p7)
}
  0x13   :  { %s865_s19 = smov 64   ;;  %s866_s20 = smov 4  }
  0x14   :  { %41 = dma.hbm_to_vmem [thread:$0]  %s1063_s1, 256, %s36_s10, [#allocation6], %s865_s19, %s865_s19, %s866_s20  }
  0x15   :  { %s867_s23 = smov [#allocation8]   ;;  %s868_s25 = smov [#allocation2]  }
  0x16   :  { %s63_s24 = sshll.u32 %s867_s23, 4  ;;  %s23_s26 = sshll.u32 %s868_s25, 4  ;;  %s64_s24 = int_to_ptr.vmem [resolvable:$true] %s63_s24  ;;  %s24_s26 = int_to_ptr.vmem [resolvable:$true] %s23_s26 }
  0x17   :  { %s746_s29 = scalar_lea.hbm %s1067_s5, 1024 }
  0x18   :  { %p747_p8 = scmp.ne.s32.totalorder %s1067_s5, %s746_s29  ;;  %p750_p9 = scmp.lt.u32.totalorder %s746_s29, %s1067_s5 }
  0x1a   :  { %p752_p10 = pnand %p750_p9, %p747_p8 }
  0x1c   :  { %755 = shalt.err (!%p752_p10)
}
  0x1d   :  { %s756_s1 = scalar_lea.vmem %s64_s24, 1024  ;;  %p761_p12 = scmp.lt.s32.totalorder %s64_s24, %s64_s24 }
  0x1e   :  { %p757_p11 = scmp.ne.s32.totalorder %s64_s24, %s756_s1  ;;  %p762_p13 = scmp.lt.s32.totalorder %s756_s1, %s756_s1 }
  0x20   :  { %p763_p0 = por %p762_p13, %p761_p12 }
  0x22   :  { %p764_p1 = pnand %p763_p0, %p757_p11 }
  0x24   :  { %767 = shalt.err (!%p764_p1)
}
  0x25   :  { %69 = dma.hbm_to_vmem [thread:$0]  %s1067_s5, 1024, %s64_s24, [#allocation9], %s865_s19, %s865_s19, %s866_s20  }
  0x26   :  { %s768_s17 = scalar_lea.hbm %s1062_s0, 128 }
  0x27   :  { %p769_p2 = scmp.ne.s32.totalorder %s1062_s0, %s768_s17  ;;  %p772_p3 = scmp.lt.u32.totalorder %s768_s17, %s1062_s0 }
  0x29   :  { %p774_p4 = pnand %p772_p3, %p769_p2 }
  0x2b   :  { %777 = shalt.err (!%p774_p4)
}
  0x2c   :  { %s778_s25 = scalar_lea.vmem %s24_s26, 128  ;;  %s782_s27 = scalar_lea.vmem %s24_s26, 256 }
  0x2d   :  { %p779_p5 = scmp.ne.s32.totalorder %s24_s26, %s778_s25  ;;  %p783_p6 = scmp.lt.s32.totalorder %s24_s26, %s24_s26 }
  0x2e   :  { %p784_p7 = scmp.lt.s32.totalorder %s782_s27, %s778_s25 }
  0x30   :  { %p785_p8 = por %p784_p7, %p783_p6 }
  0x32   :  { %p786_p9 = pnand %p785_p8, %p779_p5 }
  0x34   :  { %789 = shalt.err (!%p786_p9)
}
  0x35   :  { %s869_s5 = smov 128   ;;  %s870_s24 = smov 8  }
  0x36   :  { %29 = dma.hbm_to_vmem [thread:$0]  %s1062_s0, 128, %s24_s26, [#allocation3], %s869_s5, %s869_s5, %s870_s24  }
  0x37   :  { %s871_s30 = smov [#allocation7]   ;;  %s872_s12 = smov [#allocation10]  }
  0x38   :  { %s49_s11 = sshll.u32 %s871_s30, 4  ;;  %s77_s13 = sshll.u32 %s872_s12, 4  ;;  %s50_s11 = int_to_ptr.vmem [resolvable:$true] %s49_s11  ;;  %s78_s13 = int_to_ptr.vmem [resolvable:$true] %s77_s13 }
  0x39   :  { %s790_s14 = scalar_lea.hbm %s1065_s3, 1024 }
  0x3a   :  { %p791_p10 = scmp.ne.s32.totalorder %s1065_s3, %s790_s14  ;;  %p794_p11 = scmp.lt.u32.totalorder %s790_s14, %s1065_s3 }
  0x3c   :  { %p796_p12 = pnand %p794_p11, %p791_p10 }
  0x3e   :  { %799 = shalt.err (!%p796_p12)
}
  0x3f   :  { %s800_s0 = scalar_lea.vmem %s50_s11, 1024  ;;  %p805_p0 = scmp.lt.s32.totalorder %s50_s11, %s50_s11 }
  0x40   :  { %p801_p13 = scmp.ne.s32.totalorder %s50_s11, %s800_s0  ;;  %p806_p1 = scmp.lt.s32.totalorder %s800_s0, %s800_s0 }
  0x42   :  { %p807_p2 = por %p806_p1, %p805_p0 }
  0x44   :  { %p808_p3 = pnand %p807_p2, %p801_p13 }
  0x46   :  { %811 = shalt.err (!%p808_p3)
}
  0x47   :  { %55 = dma.hbm_to_vmem [thread:$0]  %s1065_s3, 1024, %s50_s11, [#allocation6], %s865_s19, %s865_s19, %s866_s20  }
  0x48   :  { %s812_s25 = scalar_lea.hbm %s1069_s7, 1024 }
  0x49   :  { %p813_p4 = scmp.ne.s32.totalorder %s1069_s7, %s812_s25  ;;  %p816_p5 = scmp.lt.u32.totalorder %s812_s25, %s1069_s7 }
  0x4b   :  { %p818_p6 = pnand %p816_p5, %p813_p4 }
  0x4d   :  { %821 = shalt.err (!%p818_p6)
}
  0x4e   :  { %s822_s12 = scalar_lea.vmem %s78_s13, 1024  ;;  %p827_p8 = scmp.lt.s32.totalorder %s78_s13, %s78_s13 }
  0x4f   :  { %p823_p7 = scmp.ne.s32.totalorder %s78_s13, %s822_s12  ;;  %p828_p9 = scmp.lt.s32.totalorder %s822_s12, %s822_s12 }
  0x51   :  { %p829_p10 = por %p828_p9, %p827_p8 }
  0x53   :  { %p830_p11 = pnand %p829_p10, %p823_p7 }
  0x55   :  { %833 = shalt.err (!%p830_p11)
}
  0x56   :  { %83 = dma.hbm_to_vmem [thread:$0]  %s1069_s7, 1024, %s78_s13, [#allocation9], %s865_s19, %s865_s19, %s866_s20  }
  0x57   :  { %856 = dma.done.wait [#allocation3], 256  }
  0x58   :  { %857 = vsyncadd [#allocation3], 4294967040 }
  0x59   :  { %858 = dma.done.wait [#allocation6], 1280  }
  0x5a   :  { %859 = vsyncadd [#allocation6], 4294966016 }
  0x5b   :  { %860 = dma.done.wait [#allocation9], 2048  }
  0x5c   :  { %861 = vsyncadd [#allocation9], 4294965248  ;;  %v873_v0 = vmov 0.0   ;;  %vm874_vm0 = vmmov 0   ;;  %v686_v1 = vld [vmem:[#allocation5] sm:$0xff]   ;;  %v687_v2 = vld [vmem:[#allocation5 + $0x8] sm:$0xff]  }
  0x5d   :  { %606 = vmatprep.subr.bf16.mxu0 %v873_v0  ;;  %610 = vmatprep.mubr.msk.bf16.mxu0 %vm874_vm0, %v873_v0  ;;  %v102_v3 = vld [vmem:[#allocation2] sm:$0xff]  ;;  %v103_v4 = vld [vmem:[#allocation2 + $0x8] sm:$0xff]  ;;  %vm128_vm1 = vcmask 261120   ;;  %v690_v8 = vld [vmem:[#allocation7 + $0x10] sm:$0xff]  }
  0x5e   :  { %614 = vmatprep.subr.bf16.mxu1 %v873_v0  ;;  %630 = vmatprep.mubr.msk.bf16.mxu1 %vm874_vm0, %v873_v0  ;;  %v688_v5 = vld [vmem:[#allocation7] sm:$0xff]   ;;  %v104_v6 = vpack.c.bf16 %v103_v4, %v102_v3  ;;  %v689_v7 = vld [vmem:[#allocation7 + $0x8] sm:$0xff]   ;;  %v691_v9 = vld [vmem:[#allocation7 + $0x18] sm:$0xff]  }
  0x5f   :  { %607 = vmatpush3.bf16.msra.mxu0 %v686_v1  ;;  %615 = vmatpush3.bf16.msra.mxu1 %v688_v5  ;;  %v692_v10 = vld [vmem:[#allocation7 + $0x20] sm:$0xff]   ;;  %v693_v11 = vld [vmem:[#allocation7 + $0x28] sm:$0xff]   ;;  %v694_v12 = vld [vmem:[#allocation7 + $0x30] sm:$0xff]  }
  0x60   :  { %608 = vmatprep.subr.bf16.mxu0 %v873_v0  ;;  %616 = vmatprep.subr.bf16.mxu1 %v873_v0  ;;  %v695_v13 = vld [vmem:[#allocation7 + $0x38] sm:$0xff]   ;;  %v696_v14 = vld [vmem:[#allocation8] sm:$0xff]   ;;  %v697_v15 = vld [vmem:[#allocation8 + $0x8] sm:$0xff]  }
  0x61   :  { %v698_v16 = vld [vmem:[#allocation8 + $0x10] sm:$0xff]   ;;  %v699_v17 = vld [vmem:[#allocation8 + $0x18] sm:$0xff]   ;;  %v543_v18 = vld [vmem:[%s1064_s2] ss:$0 sm:$0xff] }
  0x62   :  { %v700_v28 = vld [vmem:[#allocation8 + $0x20] sm:$0xff]   ;;  %v701_v29 = vld [vmem:[#allocation8 + $0x28] sm:$0xff]   ;;  %v702_v30 = vld [vmem:[#allocation8 + $0x30] sm:$0xff]  }
  0x63   :  { %609 = vmatpush3.bf16.msra.mxu0 %v687_v2  ;;  %617 = vmatpush3.bf16.msra.mxu1 %v689_v7  ;;  %v703_v31 = vld [vmem:[#allocation8 + $0x38] sm:$0xff]   ;;  %v704_v32 = vld [vmem:[#allocation10] sm:$0xff]   ;;  %v705_v33 = vld [vmem:[#allocation10 + $0x8] sm:$0xff]  }
  0x64   :  { %634 = vmatprep.subr.bf16.mxu0 %v873_v0  ;;  %618 = vmatprep.subr.bf16.mxu1 %v873_v0  ;;  %v706_v34 = vld [vmem:[#allocation10 + $0x10] sm:$0xff]   ;;  %v707_v35 = vld [vmem:[#allocation10 + $0x18] sm:$0xff]   ;;  %v547_v36 = vld [vmem:[%s1066_s4] ss:$0 sm:$0xff] }
  0x65   :  { %v708_v46 = vld [vmem:[#allocation10 + $0x20] sm:$0xff]   ;;  %v709_v47 = vld [vmem:[#allocation10 + $0x28] sm:$0xff]   ;;  %v710_v48 = vld [vmem:[#allocation10 + $0x30] sm:$0xff]  }
  0x66   :  { %611 = vmatmul.mubr.msk.bf16.vlgmr.msra.gmra.mrb[0].mxu0 %vm128_vm1, %v104_v6  ;;  %v711_v49 = vld [vmem:[#allocation10 + $0x38] sm:$0xff]   ;;  %v556_v50 = vld [vmem:[%s1068_s6] ss:$0 sm:$0xff] }
  0x67   :  { %650 = vmatprep.mubr.msk.bf16.mxu0 %vm874_vm0, %v873_v0  ;;  %619 = vmatpush3.bf16.msra.mxu1 %v690_v8  ;;  %v565_v60 = vld [vmem:[%s1070_s8] ss:$0 sm:$0xff] }
  0x68   :  { %620 = vmatprep.subr.bf16.mxu1 %v873_v0  ;;  %635 = vmatpush3.bf16.msra.mxu0 %v696_v14 }
  0x69   :  { %636 = vmatprep.subr.bf16.mxu0 %v873_v0 }
  0x6b   :  { %621 = vmatpush3.bf16.msra.mxu1 %v691_v9 }
  0x6c   :  { %622 = vmatprep.subr.bf16.mxu1 %v873_v0  ;;  %637 = vmatpush3.bf16.msra.mxu0 %v697_v15 }
  0x6d   :  { %638 = vmatprep.subr.bf16.mxu0 %v873_v0 }
  0x6f   :  { %623 = vmatpush3.bf16.msra.mxu1 %v692_v10 }
  0x70   :  { %624 = vmatprep.subr.bf16.mxu1 %v873_v0  ;;  %639 = vmatpush3.bf16.msra.mxu0 %v698_v16 }
  0x71   :  { %640 = vmatprep.subr.bf16.mxu0 %v873_v0 }
  0x73   :  { %625 = vmatpush3.bf16.msra.mxu1 %v693_v11 }
  0x74   :  { %626 = vmatprep.subr.bf16.mxu1 %v873_v0  ;;  %641 = vmatpush3.bf16.msra.mxu0 %v699_v17 }
  0x75   :  { %642 = vmatprep.subr.bf16.mxu0 %v873_v0 }
  0x77   :  { %627 = vmatpush3.bf16.msra.mxu1 %v694_v12 }
  0x78   :  { %628 = vmatprep.subr.bf16.mxu1 %v873_v0  ;;  %643 = vmatpush3.bf16.msra.mxu0 %v700_v28 }
  0x79   :  { %644 = vmatprep.subr.bf16.mxu0 %v873_v0 }
  0x7b   :  { %629 = vmatpush3.bf16.msra.mxu1 %v695_v13 }
  0x7c   :  { %654 = vmatprep.subr.bf16.mxu1 %v873_v0  ;;  %645 = vmatpush3.bf16.msra.mxu0 %v701_v29 }
  0x7d   :  { %646 = vmatprep.subr.bf16.mxu0 %v873_v0 }
  0x80   :  { %647 = vmatpush3.bf16.msra.mxu0 %v702_v30 }
  0x81   :  { %648 = vmatprep.subr.bf16.mxu0 %v873_v0 }
  0x84   :  { %649 = vmatpush3.bf16.msra.mxu0 %v703_v31 }
 0x139   :  { %v166_v19 = vpop.f32.mrb[0].mxu0 }
 0x13a   :  { %v167_v20 = vadd.f32 %v543_v18, %v166_v19  ;;  %v612_v21 = vpop.f32.mrb[1].mxu0 }
 0x13b   :  { %v169_v22 = vpop.f32.mrb[2].mxu0 }
 0x13c   :  { %v170_v23 = vadd.f32 %v543_v18, %v169_v22  ;;  %v613_v24 = vpop.f32.mrb[3].mxu0  ;;  %712 = vtanh.f32 %v167_v20 }
 0x13e   :  { %714 = vtanh.f32 %v170_v23 }
 0x146   :  { %v713_v25 = vpop.eup %712 }
 0x148   :  { %v715_v26 = vpop.eup %714 }
 0x149   :  { %v175_v27 = vpack.c.bf16 %v715_v26, %v713_v25 }
 0x14b   :  { %631 = vmatmul.mubr.bf16.vlgmr.msra.gmra.mrb[0].mxu1 %v175_v27 }
 0x14c   :  { %670 = vmatprep.mubr.msk.bf16.mxu1 %vm874_vm0, %v873_v0  ;;  %655 = vmatpush3.bf16.msra.mxu1 %v704_v32 }
 0x14d   :  { %656 = vmatprep.subr.bf16.mxu1 %v873_v0 }
 0x150   :  { %657 = vmatpush3.bf16.msra.mxu1 %v705_v33 }
 0x151   :  { %658 = vmatprep.subr.bf16.mxu1 %v873_v0 }
 0x154   :  { %659 = vmatpush3.bf16.msra.mxu1 %v706_v34 }
 0x155   :  { %660 = vmatprep.subr.bf16.mxu1 %v873_v0 }
 0x158   :  { %661 = vmatpush3.bf16.msra.mxu1 %v707_v35 }
 0x159   :  { %662 = vmatprep.subr.bf16.mxu1 %v873_v0 }
 0x15c   :  { %663 = vmatpush3.bf16.msra.mxu1 %v708_v46 }
 0x15d   :  { %664 = vmatprep.subr.bf16.mxu1 %v873_v0 }
 0x160   :  { %665 = vmatpush3.bf16.msra.mxu1 %v709_v47 }
 0x161   :  { %666 = vmatprep.subr.bf16.mxu1 %v873_v0 }
 0x164   :  { %667 = vmatpush3.bf16.msra.mxu1 %v710_v48 }
 0x165   :  { %668 = vmatprep.subr.bf16.mxu1 %v873_v0 }
 0x168   :  { %669 = vmatpush3.bf16.msra.mxu1 %v711_v49 }
 0x21e   :  { %v281_v37 = vpop.f32.mrb[0].mxu1 }
 0x21f   :  { %v282_v38 = vadd.f32 %v547_v36, %v281_v37  ;;  %v632_v39 = vpop.f32.mrb[1].mxu1 }
 0x220   :  { %v284_v40 = vpop.f32.mrb[2].mxu1 }
 0x221   :  { %v285_v41 = vadd.f32 %v547_v36, %v284_v40  ;;  %v633_v42 = vpop.f32.mrb[3].mxu1  ;;  %716 = vtanh.f32 %v282_v38 }
 0x223   :  { %718 = vtanh.f32 %v285_v41 }
 0x22b   :  { %v717_v43 = vpop.eup %716 }
 0x22d   :  { %v719_v44 = vpop.eup %718 }
 0x22e   :  { %v290_v45 = vpack.c.bf16 %v719_v44, %v717_v43 }
 0x230   :  { %651 = vmatmul.mubr.bf16.vlgmr.msra.gmra.mrb[4].mxu0 %v290_v45 }
 0x303   :  { %v396_v51 = vpop.f32.mrb[4].mxu0 }
 0x304   :  { %v397_v52 = vadd.f32 %v556_v50, %v396_v51  ;;  %v652_v53 = vpop.f32.mrb[5].mxu0 }
 0x305   :  { %v399_v54 = vpop.f32.mrb[6].mxu0 }
 0x306   :  { %v400_v55 = vadd.f32 %v556_v50, %v399_v54  ;;  %v653_v56 = vpop.f32.mrb[7].mxu0  ;;  %720 = vtanh.f32 %v397_v52 }
 0x308   :  { %722 = vtanh.f32 %v400_v55 }
 0x310   :  { %v721_v57 = vpop.eup %720 }
 0x312   :  { %v723_v58 = vpop.eup %722 }
 0x313   :  { %v405_v59 = vpack.c.bf16 %v723_v58, %v721_v57 }
 0x315   :  { %671 = vmatmul.mubr.bf16.vlgmr.msra.gmra.mrb[4].mxu1 %v405_v59 }
 0x3e8   :  { %v511_v61 = vpop.f32.mrb[4].mxu1 }
 0x3e9   :  { %v512_v62 = vadd.f32 %v565_v60, %v511_v61  ;;  %v672_v63 = vpop.f32.mrb[5].mxu1 }
 0x3ea   :  { %v514_v0 = vpop.f32.mrb[6].mxu1 }
 0x3eb   :  { %v574_v1 = vclamps-f32 %v512_v62, 0.2  ;;  %v515_v2 = vadd.f32 %v565_v60, %v514_v0  ;;  %v673_v3 = vpop.f32.mrb[7].mxu1 }
 0x3ed   :  { %522 = vst [vmem:[#allocation11] sm:$0xff] %v574_v1  ;;  %v575_v4 = vclamps-f32 %v515_v2, 0.2 }
 0x3ef   :  { %523 = vst [vmem:[#allocation11 + $0x8] sm:$0xff] %v575_v4 }
 0x3f0   :  { %528 = vsyncadd [#allocation4], 128  ;;  %s875_s6 = smov [#allocation11]  }
 0x3f1   :  { %s529_s14 = sshll.u32 %s875_s6, 4  ;;  %s530_s14 = int_to_ptr.vmem [resolvable:$true] %s529_s14 }
 0x3f2   :  { %s834_s15 = scalar_lea.vmem %s530_s14, 128  ;;  %s838_s16 = scalar_lea.vmem %s530_s14, 256 }
 0x3f3   :  { %p835_p12 = scmp.ne.s32.totalorder %s530_s14, %s834_s15  ;;  %p839_p13 = scmp.lt.s32.totalorder %s530_s14, %s530_s14 }
 0x3f4   :  { %p840_p0 = scmp.lt.s32.totalorder %s838_s16, %s834_s15 }
 0x3f6   :  { %p841_p1 = por %p840_p0, %p839_p13 }
 0x3f8   :  { %p842_p2 = pnand %p841_p1, %p835_p12 }
 0x3fa   :  { %845 = shalt.err (!%p842_p2)
}
 0x3fb   :  { %s846_s18 = scalar_lea.hbm %s1071_s9, 128 }
 0x3fc   :  { %p847_p3 = scmp.ne.s32.totalorder %s1071_s9, %s846_s18  ;;  %p850_p4 = scmp.lt.u32.totalorder %s846_s18, %s1071_s9 }
 0x3fe   :  { %p852_p5 = pnand %p850_p4, %p847_p3 }
 0x400   :  { %855 = shalt.err (!%p852_p5)
}
 0x401   :  { %535 = dma.vmem_to_hbm [thread:$0]  %s530_s14, 128, %s1071_s9, [#allocation4], %s869_s5, %s869_s5, %s870_s24  }
 0x402   :  { %862 = dma.done.wait [#allocation4], 256  }
 0x403   :  { %863 = vsyncadd [#allocation4], 4294967040 }
 0x404   :  { %539 = vsyncpa [#allocation3], 1 }
 0x405   :  { %540 = vsyncpa [#allocation6], 1 }
 0x406   :  { %541 = vsyncpa [#allocation9], 1 }
 0x407   :  { %542 = vsyncpa [#allocation4], 1 }

// kernel: tpu_custom_call.1
= control target key start
LH: loop header
LB: loop body
LE: loop exit
PB: predicated region body
PF: predicated region fallthrough
CT: control target
= control target key end

     0   :  { %14 = vsyncpa [#allocation3], 0  ;;  %s1062_s0 = inlined_call_operand.hbm [shape: f32[8,32], index: 0, kind: input, shape index: {}]   ;;  %s1063_s1 = inlined_call_operand.hbm [shape: bf16[32,128], index: 1, kind: input, shape index: {}]   ;;  %s1064_s2 = inlined_call_operand.vmem [shape: f32[1,128], index: 2, kind: input, shape index: {}]   ;;  %s1065_s3 = inlined_call_operand.hbm [shape: bf16[128,128], index: 3, kind: input, shape index: {}]   ;;  %s1066_s4 = inlined_call_operand.vmem [shape: f32[1,128], index: 4, kind: input, shape index: {}]   ;;  %s1067_s5 = inlined_call_operand.hbm [shape: bf16[128,128], index: 5, kind: input, shape index: {}]   ;;  %s1068_s6 = inlined_call_operand.vmem [shape: f32[1,128], index: 6, kind: input, shape index: {}]   ;;  %s1069_s7 = inlined_call_operand.hbm [shape: bf16[128,128], index: 7, kind: input, shape index: {}]   ;;  %s1070_s8 = inlined_call_operand.vmem [shape: f32[1,128], index: 8, kind: input, shape index: {}]   ;;  %s1071_s9 = inlined_call_operand.hbm [shape: f32[8,128], index: 9, kind: output, shape index: {}]  }
   0x1   :  { %15 = vsyncpa [#allocation6], 0 }
   0x2   :  { %16 = vsyncpa [#allocation9], 0 }
   0x3   :  { %17 = vsyncpa [#allocation4], 0 }
   0x4   :  { %22 = vsyncadd [#allocation3], 128  ;;  %s864_s30 = smov [#allocation5]   ;;  %s724_s13 = scalar_lea.hbm %s1063_s1, 256 }
   0x5   :  { %s35_s10 = sshll.u32 %s864_s30, 4  ;;  %p725_p0 = scmp.ne.s32.totalorder %s1063_s1, %s724_s13  ;;  %s36_s10 = int_to_ptr.vmem [resolvable:$true] %s35_s10 }
   0x6   :  { %p728_p1 = scmp.lt.u32.totalorder %s724_s13, %s1063_s1 }
   0x8   :  { %p730_p2 = pnand %p728_p1, %p725_p0 }
   0xa   :  { %733 = shalt.err (!%p730_p2)
}
   0xb   :  { %s734_s18 = scalar_lea.vmem %s36_s10, 256  ;;  %p739_p4 = scmp.lt.s32.totalorder %s36_s10, %s36_s10 }
   0xc   :  { %p735_p3 = scmp.ne.s32.totalorder %s36_s10, %s734_s18  ;;  %p740_p5 = scmp.lt.s32.totalorder %s734_s18, %s734_s18 }
   0xe   :  { %p741_p6 = por %p740_p5, %p739_p4 }
  0x10   :  { %p742_p7 = pnand %p741_p6, %p735_p3 }
  0x12   :  { %745 = shalt.err (!%p742_p7)
}
  0x13   :  { %s865_s19 = smov 64   ;;  %s866_s20 = smov 4  }
  0x14   :  { %41 = dma.hbm_to_vmem [thread:$0]  %s1063_s1, 256, %s36_s10, [#allocation6], %s865_s19, %s865_s19, %s866_s20  }
  0x15   :  { %s867_s23 = smov [#allocation8]   ;;  %s868_s25 = smov [#allocation2]  }
  0x16   :  { %s63_s24 = sshll.u32 %s867_s23, 4  ;;  %s23_s26 = sshll.u32 %s868_s25, 4  ;;  %s64_s24 = int_to_ptr.vmem [resolvable:$true] %s63_s24  ;;  %s24_s26 = int_to_ptr.vmem [resolvable:$true] %s23_s26 }
  0x17   :  { %s746_s29 = scalar_lea.hbm %s1067_s5, 1024 }
  0x18   :  { %p747_p8 = scmp.ne.s32.totalorder %s1067_s5, %s746_s29  ;;  %p750_p9 = scmp.lt.u32.totalorder %s746_s29, %s1067_s5 }
  0x1a   :  { %p752_p10 = pnand %p750_p9, %p747_p8 }
  0x1c   :  { %755 = shalt.err (!%p752_p10)
}
  0x1d   :  { %s756_s1 = scalar_lea.vmem %s64_s24, 1024  ;;  %p761_p12 = scmp.lt.s32.totalorder %s64_s24, %s64_s24 }
  0x1e   :  { %p757_p11 = scmp.ne.s32.totalorder %s64_s24, %s756_s1  ;;  %p762_p13 = scmp.lt.s32.totalorder %s756_s1, %s756_s1 }
  0x20   :  { %p763_p0 = por %p762_p13, %p761_p12 }
  0x22   :  { %p764_p1 = pnand %p763_p0, %p757_p11 }
  0x24   :  { %767 = shalt.err (!%p764_p1)
}
  0x25   :  { %69 = dma.hbm_to_vmem [thread:$0]  %s1067_s5, 1024, %s64_s24, [#allocation9], %s865_s19, %s865_s19, %s866_s20  }
  0x26   :  { %s768_s17 = scalar_lea.hbm %s1062_s0, 128 }
  0x27   :  { %p769_p2 = scmp.ne.s32.totalorder %s1062_s0, %s768_s17  ;;  %p772_p3 = scmp.lt.u32.totalorder %s768_s17, %s1062_s0 }
  0x29   :  { %p774_p4 = pnand %p772_p3, %p769_p2 }
  0x2b   :  { %777 = shalt.err (!%p774_p4)
}
  0x2c   :  { %s778_s25 = scalar_lea.vmem %s24_s26, 128  ;;  %s782_s27 = scalar_lea.vmem %s24_s26, 256 }
  0x2d   :  { %p779_p5 = scmp.ne.s32.totalorder %s24_s26, %s778_s25  ;;  %p783_p6 = scmp.lt.s32.totalorder %s24_s26, %s24_s26 }
  0x2e   :  { %p784_p7 = scmp.lt.s32.totalorder %s782_s27, %s778_s25 }
  0x30   :  { %p785_p8 = por %p784_p7, %p783_p6 }
  0x32   :  { %p786_p9 = pnand %p785_p8, %p779_p5 }
  0x34   :  { %789 = shalt.err (!%p786_p9)
}
  0x35   :  { %s869_s5 = smov 128   ;;  %s870_s24 = smov 8  }
  0x36   :  { %29 = dma.hbm_to_vmem [thread:$0]  %s1062_s0, 128, %s24_s26, [#allocation3], %s869_s5, %s869_s5, %s870_s24  }
  0x37   :  { %s871_s30 = smov [#allocation7]   ;;  %s872_s12 = smov [#allocation10]  }
  0x38   :  { %s49_s11 = sshll.u32 %s871_s30, 4  ;;  %s77_s13 = sshll.u32 %s872_s12, 4  ;;  %s50_s11 = int_to_ptr.vmem [resolvable:$true] %s49_s11  ;;  %s78_s13 = int_to_ptr.vmem [resolvable:$true] %s77_s13 }
  0x39   :  { %s790_s14 = scalar_lea.hbm %s1065_s3, 1024 }
  0x3a   :  { %p791_p10 = scmp.ne.s32.totalorder %s1065_s3, %s790_s14  ;;  %p794_p11 = scmp.lt.u32.totalorder %s790_s14, %s1065_s3 }
  0x3c   :  { %p796_p12 = pnand %p794_p11, %p791_p10 }
  0x3e   :  { %799 = shalt.err (!%p796_p12)
}
  0x3f   :  { %s800_s0 = scalar_lea.vmem %s50_s11, 1024  ;;  %p805_p0 = scmp.lt.s32.totalorder %s50_s11, %s50_s11 }
  0x40   :  { %p801_p13 = scmp.ne.s32.totalorder %s50_s11, %s800_s0  ;;  %p806_p1 = scmp.lt.s32.totalorder %s800_s0, %s800_s0 }
  0x42   :  { %p807_p2 = por %p806_p1, %p805_p0 }
  0x44   :  { %p808_p3 = pnand %p807_p2, %p801_p13 }
  0x46   :  { %811 = shalt.err (!%p808_p3)
}
  0x47   :  { %55 = dma.hbm_to_vmem [thread:$0]  %s1065_s3, 1024, %s50_s11, [#allocation6], %s865_s19, %s865_s19, %s866_s20  }
  0x48   :  { %s812_s25 = scalar_lea.hbm %s1069_s7, 1024 }
  0x49   :  { %p813_p4 = scmp.ne.s32.totalorder %s1069_s7, %s812_s25  ;;  %p816_p5 = scmp.lt.u32.totalorder %s812_s25, %s1069_s7 }
  0x4b   :  { %p818_p6 = pnand %p816_p5, %p813_p4 }
  0x4d   :  { %821 = shalt.err (!%p818_p6)
}
  0x4e   :  { %s822_s12 = scalar_lea.vmem %s78_s13, 1024  ;;  %p827_p8 = scmp.lt.s32.totalorder %s78_s13, %s78_s13 }
  0x4f   :  { %p823_p7 = scmp.ne.s32.totalorder %s78_s13, %s822_s12  ;;  %p828_p9 = scmp.lt.s32.totalorder %s822_s12, %s822_s12 }
  0x51   :  { %p829_p10 = por %p828_p9, %p827_p8 }
  0x53   :  { %p830_p11 = pnand %p829_p10, %p823_p7 }
  0x55   :  { %833 = shalt.err (!%p830_p11)
}
  0x56   :  { %83 = dma.hbm_to_vmem [thread:$0]  %s1069_s7, 1024, %s78_s13, [#allocation9], %s865_s19, %s865_s19, %s866_s20  }
  0x57   :  { %856 = dma.done.wait [#allocation3], 256  }
  0x58   :  { %857 = vsyncadd [#allocation3], 4294967040 }
  0x59   :  { %858 = dma.done.wait [#allocation6], 1280  }
  0x5a   :  { %859 = vsyncadd [#allocation6], 4294966016 }
  0x5b   :  { %860 = dma.done.wait [#allocation9], 2048  }
  0x5c   :  { %861 = vsyncadd [#allocation9], 4294965248  ;;  %v873_v0 = vmov 0.0   ;;  %vm874_vm0 = vmmov 0   ;;  %v686_v1 = vld [vmem:[#allocation5] sm:$0xff]   ;;  %v687_v2 = vld [vmem:[#allocation5 + $0x8] sm:$0xff]  }
  0x5d   :  { %606 = vmatprep.subr.bf16.mxu0 %v873_v0  ;;  %610 = vmatprep.mubr.msk.bf16.mxu0 %vm874_vm0, %v873_v0  ;;  %v102_v3 = vld [vmem:[#allocation2] sm:$0xff]  ;;  %v103_v4 = vld [vmem:[#allocation2 + $0x8] sm:$0xff]  ;;  %vm128_vm1 = vcmask 261120   ;;  %v690_v8 = vld [vmem:[#allocation7 + $0x10] sm:$0xff]  }
  0x5e   :  { %614 = vmatprep.subr.bf16.mxu1 %v873_v0  ;;  %630 = vmatprep.mubr.msk.bf16.mxu1 %vm874_vm0, %v873_v0  ;;  %v688_v5 = vld [vmem:[#allocation7] sm:$0xff]   ;;  %v104_v6 = vpack.c.bf16 %v103_v4, %v102_v3  ;;  %v689_v7 = vld [vmem:[#allocation7 + $0x8] sm:$0xff]   ;;  %v691_v9 = vld [vmem:[#allocation7 + $0x18] sm:$0xff]  }
  0x5f   :  { %607 = vmatpush3.bf16.msra.mxu0 %v686_v1  ;;  %615 = vmatpush3.bf16.msra.mxu1 %v688_v5  ;;  %v692_v10 = vld [vmem:[#allocation7 + $0x20] sm:$0xff]   ;;  %v693_v11 = vld [vmem:[#allocation7 + $0x28] sm:$0xff]   ;;  %v694_v12 = vld [vmem:[#allocation7 + $0x30] sm:$0xff]  }
  0x60   :  { %608 = vmatprep.subr.bf16.mxu0 %v873_v0  ;;  %616 = vmatprep.subr.bf16.mxu1 %v873_v0  ;;  %v695_v13 = vld [vmem:[#allocation7 + $0x38] sm:$0xff]   ;;  %v696_v14 = vld [vmem:[#allocation8] sm:$0xff]   ;;  %v697_v15 = vld [vmem:[#allocation8 + $0x8] sm:$0xff]  }
  0x61   :  { %v698_v16 = vld [vmem:[#allocation8 + $0x10] sm:$0xff]   ;;  %v699_v17 = vld [vmem:[#allocation8 + $0x18] sm:$0xff]   ;;  %v543_v18 = vld [vmem:[%s1064_s2] ss:$0 sm:$0xff] }
  0x62   :  { %v700_v28 = vld [vmem:[#allocation8 + $0x20] sm:$0xff]   ;;  %v701_v29 = vld [vmem:[#allocation8 + $0x28] sm:$0xff]   ;;  %v702_v30 = vld [vmem:[#allocation8 + $0x30] sm:$0xff]  }
  0x63   :  { %609 = vmatpush3.bf16.msra.mxu0 %v687_v2  ;;  %617 = vmatpush3.bf16.msra.mxu1 %v689_v7  ;;  %v703_v31 = vld [vmem:[#allocation8 + $0x38] sm:$0xff]   ;;  %v704_v32 = vld [vmem:[#allocation10] sm:$0xff]   ;;  %v705_v33 = vld [vmem:[#allocation10 + $0x8] sm:$0xff]  }
  0x64   :  { %634 = vmatprep.subr.bf16.mxu0 %v873_v0  ;;  %618 = vmatprep.subr.bf16.mxu1 %v873_v0  ;;  %v706_v34 = vld [vmem:[#allocation10 + $0x10] sm:$0xff]   ;;  %v707_v35 = vld [vmem:[#allocation10 + $0x18] sm:$0xff]   ;;  %v547_v36 = vld [vmem:[%s1066_s4] ss:$0 sm:$0xff] }
  0x65   :  { %v708_v46 = vld [vmem:[#allocation10 + $0x20] sm:$0xff]   ;;  %v709_v47 = vld [vmem:[#allocation10 + $0x28] sm:$0xff]   ;;  %v710_v48 = vld [vmem:[#allocation10 + $0x30] sm:$0xff]  }
  0x66   :  { %611 = vmatmul.mubr.msk.bf16.vlgmr.msra.gmra.mrb[0].mxu0 %vm128_vm1, %v104_v6  ;;  %v711_v49 = vld [vmem:[#allocation10 + $0x38] sm:$0xff]   ;;  %v556_v50 = vld [vmem:[%s1068_s6] ss:$0 sm:$0xff] }
  0x67   :  { %650 = vmatprep.mubr.msk.bf16.mxu0 %vm874_vm0, %v873_v0  ;;  %619 = vmatpush3.bf16.msra.mxu1 %v690_v8  ;;  %v565_v60 = vld [vmem:[%s1070_s8] ss:$0 sm:$0xff] }
  0x68   :  { %620 = vmatprep.subr.bf16.mxu1 %v873_v0  ;;  %635 = vmatpush3.bf16.msra.mxu0 %v696_v14 }
  0x69   :  { %636 = vmatprep.subr.bf16.mxu0 %v873_v0 }
  0x6b   :  { %621 = vmatpush3.bf16.msra.mxu1 %v691_v9 }
  0x6c   :  { %622 = vmatprep.subr.bf16.mxu1 %v873_v0  ;;  %637 = vmatpush3.bf16.msra.mxu0 %v697_v15 }
  0x6d   :  { %638 = vmatprep.subr.bf16.mxu0 %v873_v0 }
  0x6f   :  { %623 = vmatpush3.bf16.msra.mxu1 %v692_v10 }
  0x70   :  { %624 = vmatprep.subr.bf16.mxu1 %v873_v0  ;;  %639 = vmatpush3.bf16.msra.mxu0 %v698_v16 }
  0x71   :  { %640 = vmatprep.subr.bf16.mxu0 %v873_v0 }
  0x73   :  { %625 = vmatpush3.bf16.msra.mxu1 %v693_v11 }
  0x74   :  { %626 = vmatprep.subr.bf16.mxu1 %v873_v0  ;;  %641 = vmatpush3.bf16.msra.mxu0 %v699_v17 }
  0x75   :  { %642 = vmatprep.subr.bf16.mxu0 %v873_v0 }
  0x77   :  { %627 = vmatpush3.bf16.msra.mxu1 %v694_v12 }
  0x78   :  { %628 = vmatprep.subr.bf16.mxu1 %v873_v0  ;;  %643 = vmatpush3.bf16.msra.mxu0 %v700_v28 }
  0x79   :  { %644 = vmatprep.subr.bf16.mxu0 %v873_v0 }
  0x7b   :  { %629 = vmatpush3.bf16.msra.mxu1 %v695_v13 }
  0x7c   :  { %654 = vmatprep.subr.bf16.mxu1 %v873_v0  ;;  %645 = vmatpush3.bf16.msra.mxu0 %v701_v29 }
  0x7d   :  { %646 = vmatprep.subr.bf16.mxu0 %v873_v0 }
  0x80   :  { %647 = vmatpush3.bf16.msra.mxu0 %v702_v30 }
  0x81   :  { %648 = vmatprep.subr.bf16.mxu0 %v873_v0 }
  0x84   :  { %649 = vmatpush3.bf16.msra.mxu0 %v703_v31 }
 0x139   :  { %v166_v19 = vpop.f32.mrb[0].mxu0 }
 0x13a   :  { %v167_v20 = vadd.f32 %v543_v18, %v166_v19  ;;  %v612_v21 = vpop.f32.mrb[1].mxu0 }
 0x13b   :  { %v169_v22 = vpop.f32.mrb[2].mxu0 }
 0x13c   :  { %v170_v23 = vadd.f32 %v543_v18, %v169_v22  ;;  %v613_v24 = vpop.f32.mrb[3].mxu0  ;;  %712 = vtanh.f32 %v167_v20 }
 0x13e   :  { %714 = vtanh.f32 %v170_v23 }
 0x146   :  { %v713_v25 = vpop.eup %712 }
 0x148   :  { %v715_v26 = vpop.eup %714 }
 0x149   :  { %v175_v27 = vpack.c.bf16 %v715_v26, %v713_v25 }
 0x14b   :  { %631 = vmatmul.mubr.bf16.vlgmr.msra.gmra.mrb[0].mxu1 %v175_v27 }
 0x14c   :  { %670 = vmatprep.mubr.msk.bf16.mxu1 %vm874_vm0, %v873_v0  ;;  %655 = vmatpush3.bf16.msra.mxu1 %v704_v32 }
 0x14d   :  { %656 = vmatprep.subr.bf16.mxu1 %v873_v0 }
 0x150   :  { %657 = vmatpush3.bf16.msra.mxu1 %v705_v33 }
 0x151   :  { %658 = vmatprep.subr.bf16.mxu1 %v873_v0 }
 0x154   :  { %659 = vmatpush3.bf16.msra.mxu1 %v706_v34 }
 0x155   :  { %660 = vmatprep.subr.bf16.mxu1 %v873_v0 }
 0x158   :  { %661 = vmatpush3.bf16.msra.mxu1 %v707_v35 }
 0x159   :  { %662 = vmatprep.subr.bf16.mxu1 %v873_v0 }
 0x15c   :  { %663 = vmatpush3.bf16.msra.mxu1 %v708_v46 }
 0x15d   :  { %664 = vmatprep.subr.bf16.mxu1 %v873_v0 }
 0x160   :  { %665 = vmatpush3.bf16.msra.mxu1 %v709_v47 }
 0x161   :  { %666 = vmatprep.subr.bf16.mxu1 %v873_v0 }
 0x164   :  { %667 = vmatpush3.bf16.msra.mxu1 %v710_v48 }
 0x165   :  { %668 = vmatprep.subr.bf16.mxu1 %v873_v0 }
 0x168   :  { %669 = vmatpush3.bf16.msra.mxu1 %v711_v49 }
 0x21e   :  { %v281_v37 = vpop.f32.mrb[0].mxu1 }
 0x21f   :  { %v282_v38 = vadd.f32 %v547_v36, %v281_v37  ;;  %v632_v39 = vpop.f32.mrb[1].mxu1 }
 0x220   :  { %v284_v40 = vpop.f32.mrb[2].mxu1 }
 0x221   :  { %v285_v41 = vadd.f32 %v547_v36, %v284_v40  ;;  %v633_v42 = vpop.f32.mrb[3].mxu1  ;;  %716 = vtanh.f32 %v282_v38 }
 0x223   :  { %718 = vtanh.f32 %v285_v41 }
 0x22b   :  { %v717_v43 = vpop.eup %716 }
 0x22d   :  { %v719_v44 = vpop.eup %718 }
 0x22e   :  { %v290_v45 = vpack.c.bf16 %v719_v44, %v717_v43 }
 0x230   :  { %651 = vmatmul.mubr.bf16.vlgmr.msra.gmra.mrb[4].mxu0 %v290_v45 }
 0x303   :  { %v396_v51 = vpop.f32.mrb[4].mxu0 }
 0x304   :  { %v397_v52 = vadd.f32 %v556_v50, %v396_v51  ;;  %v652_v53 = vpop.f32.mrb[5].mxu0 }
 0x305   :  { %v399_v54 = vpop.f32.mrb[6].mxu0 }
 0x306   :  { %v400_v55 = vadd.f32 %v556_v50, %v399_v54  ;;  %v653_v56 = vpop.f32.mrb[7].mxu0  ;;  %720 = vtanh.f32 %v397_v52 }
 0x308   :  { %722 = vtanh.f32 %v400_v55 }
 0x310   :  { %v721_v57 = vpop.eup %720 }
 0x312   :  { %v723_v58 = vpop.eup %722 }
 0x313   :  { %v405_v59 = vpack.c.bf16 %v723_v58, %v721_v57 }
 0x315   :  { %671 = vmatmul.mubr.bf16.vlgmr.msra.gmra.mrb[4].mxu1 %v405_v59 }
 0x3e8   :  { %v511_v61 = vpop.f32.mrb[4].mxu1 }
 0x3e9   :  { %v512_v62 = vadd.f32 %v565_v60, %v511_v61  ;;  %v672_v63 = vpop.f32.mrb[5].mxu1 }
 0x3ea   :  { %v514_v0 = vpop.f32.mrb[6].mxu1 }
 0x3eb   :  { %v574_v1 = vclamps-f32 %v512_v62, 0.2  ;;  %v515_v2 = vadd.f32 %v565_v60, %v514_v0  ;;  %v673_v3 = vpop.f32.mrb[7].mxu1 }
 0x3ed   :  { %522 = vst [vmem:[#allocation11] sm:$0xff] %v574_v1  ;;  %v575_v4 = vclamps-f32 %v515_v2, 0.2 }
 0x3ef   :  { %523 = vst [vmem:[#allocation11 + $0x8] sm:$0xff] %v575_v4 }
 0x3f0   :  { %528 = vsyncadd [#allocation4], 128  ;;  %s875_s6 = smov [#allocation11]  }
 0x3f1   :  { %s529_s14 = sshll.u32 %s875_s6, 4  ;;  %s530_s14 = int_to_ptr.vmem [resolvable:$true] %s529_s14 }
 0x3f2   :  { %s834_s15 = scalar_lea.vmem %s530_s14, 128  ;;  %s838_s16 = scalar_lea.vmem %s530_s14, 256 }
 0x3f3   :  { %p835_p12 = scmp.ne.s32.totalorder %s530_s14, %s834_s15  ;;  %p839_p13 = scmp.lt.s32.totalorder %s530_s14, %s530_s14 }
 0x3f4   :  { %p840_p0 = scmp.lt.s32.totalorder %s838_s16, %s834_s15 }
 0x3f6   :  { %p841_p1 = por %p840_p0, %p839_p13 }
 0x3f8   :  { %p842_p2 = pnand %p841_p1, %p835_p12 }
 0x3fa   :  { %845 = shalt.err (!%p842_p2)
}
 0x3fb   :  { %s846_s18 = scalar_lea.hbm %s1071_s9, 128 }
 0x3fc   :  { %p847_p3 = scmp.ne.s32.totalorder %s1071_s9, %s846_s18  ;;  %p850_p4 = scmp.lt.u32.totalorder %s846_s18, %s1071_s9 }
 0x3fe   :  { %p852_p5 = pnand %p850_p4, %p847_p3 }
 0x400   :  { %855 = shalt.err (!%p852_p5)
}
 0x401   :  { %535 = dma.vmem_to_hbm [thread:$0]  %s530_s14, 128, %s1071_s9, [#allocation4], %s869_s5, %s869_s5, %s870_s24  }
 0x402   :  { %862 = dma.done.wait [#allocation4], 256  }
 0x403   :  { %863 = vsyncadd [#allocation4], 4294967040 }
 0x404   :  { %539 = vsyncpa [#allocation3], 1 }
 0x405   :  { %540 = vsyncpa [#allocation6], 1 }
 0x406   :  { %541 = vsyncpa [#allocation9], 1 }
 0x407   :  { %542 = vsyncpa [#allocation4], 1 }

</bundles_post_ra>
